<compile_context>
chip_gen: v5e
topology: v5e:2x2
jax: 0.10.0
libtpu: 0.0.40
codegen_flags: <defaults>
</compile_context>

<pallas_src>
import jax
import jax.numpy as jnp
from jax.experimental import pallas as pl
from jax.experimental.pallas import tpu as pltpu

# func_post scalar parameters (deterministic).
POST_SCALE = 0.5
POST_SHIFT = 1.25


def convolved_dist_kernel(x_ref, w_ref, scale_ref, b_ref, shift_ref, out_ref):
    # ---- func_pre: z0 = x @ W  (cast the streamed f32 tile to bf16 only
    #      here, so HBM sees a single f32 read of x and the MXU runs bf16) ----
    x_bf = x_ref[...].astype(jnp.bfloat16)                       # [tb, D]
    z0 = jnp.dot(x_bf, w_ref[...],
                 preferred_element_type=jnp.float32)             # [tb, H] f32

    # ---- Gaussian whitening applied post-matmul in f32 (accuracy):
    #      z = (x@W + b - mu) * inv_sigma = z0*inv_sigma + (b-mu)*inv_sigma ----
    z = z0 * scale_ref[...] + b_ref[...]                         # [tb, H] f32

    # ---- original + func_post (folded):
    #      out = (-0.5*POST_SCALE) * sum_h z^2 + shift
    # Reduce first (no full transpose), store narrow (tb, 1) block.
    ssq = jnp.sum(z * z, axis=-1, keepdims=True)                 # [tb, 1]
    out_ref[...] = (-0.5 * POST_SCALE) * ssq + shift_ref[0, 0]   # scalar from SMEM


def _vmem_budget_bytes():
    try:
        cap = pltpu.get_tpu_info().vmem_capacity_bytes
    except Exception:
        cap = 64 * 2**20          # conservative fallback (v7x-sized)
    # Leave headroom: ~48 MiB on v7x (64 MiB phys), ~96 MiB on v5e/v6e (128 MiB).
    return int(cap * 3 // 4)


def _pick_tile_b(B, D, H, vmem_budget):
    def fits(tb):
        need = (2 * tb * D * 4        # double-buffered f32 x tile
                + 2 * D * H * 2       # resident bf16 W (default 2 buffers)
                + 4 * H * 4           # inv_sigma + b' (2 buffers each)
                + 2 * tb * 128 * 4)   # (tb,1) f32 out block, lane-padded
        return need <= int(vmem_budget * 0.8)   # headroom for compiler scratch

    cands = [c for c in (4096, 2048, 1024, 512, 256, 128)
             if B % c == 0 and fits(c)]
    # Prefer >= 4 grid steps (>= 2 per v7x TensorCore) so DMA of step i+1
    # overlaps compute of step i on both cores.
    for c in cands:
        if B // c >= 4:
            return c
    if cands:
        return cands[-1]
    return B   # tiny batches: single full tile (block == full dims is legal)


def convolved_distribution(x, w, b, mu, log_sigma, *, tile_b=None):
    B, D = x.shape
    H = w.shape[1]
    vmem_budget = _vmem_budget_bytes()
    if tile_b is None:
        tile_b = _pick_tile_b(B, D, H, vmem_budget)
    assert B % tile_b == 0, "pad the batch to a multiple of tile_b"
    assert tile_b % 128 == 0 or tile_b == B, (
        "tile_b must be lane-aligned (multiple of 128) or the full batch")
    num_tiles = B // tile_b

    # ---- fold the Gaussian parameters (once, on tiny [1,H]/scalar params) ----
    inv_sigma = jnp.exp(-log_sigma.astype(jnp.float32))                    # [1, H]
    b_folded = (b.astype(jnp.float32) - mu.astype(jnp.float32)) * inv_sigma  # [1, H]
    half_log_2pi = 0.5 * jnp.log(jnp.asarray(2.0 * jnp.pi, jnp.float32))
    c_const = -jnp.sum(log_sigma.astype(jnp.float32)) - H * half_log_2pi
    shift = (POST_SCALE * c_const + POST_SHIFT).reshape(1, 1).astype(jnp.float32)

    # W stays at its original scale in bf16 (resident; HBM cost amortized);
    # x is streamed in whatever dtype the caller supplies (no wrapper copy).
    w_bf16 = w.astype(jnp.bfloat16)

    x_bytes = jnp.dtype(x.dtype).itemsize
    vmem_need = (2 * tile_b * D * x_bytes + 2 * D * H * 2
                 + 4 * H * 4 + 2 * tile_b * 128 * 4)
    vmem_limit = int(min(vmem_budget, max(32 * 2**20, 2 * vmem_need)))

    cost = pl.CostEstimate(
        flops=2 * B * D * H + 5 * B * H,
        transcendentals=0,
        bytes_accessed=B * D * x_bytes + D * H * 2 + 2 * H * 4 + B * 4 + 4,
    )

    out = pl.pallas_call(
        convolved_dist_kernel,
        out_shape=jax.ShapeDtypeStruct((B, 1), jnp.float32),
        grid_spec=pltpu.PrefetchScalarGridSpec(
            num_scalar_prefetch=0,
            grid=(num_tiles,),
            in_specs=[
                pl.BlockSpec((tile_b, D), lambda i: (i, 0)),     # x   (streamed f32)
                pl.BlockSpec((D, H), lambda i: (0, 0)),          # W   (resident bf16)
                pl.BlockSpec((1, H), lambda i: (0, 0)),          # inv_sigma (f32)
                pl.BlockSpec((1, H), lambda i: (0, 0)),          # (b-mu)*inv_sigma (f32)
                pl.BlockSpec(memory_space=pltpu.MemorySpace.SMEM),  # folded shift scalar
            ],
            out_specs=pl.BlockSpec((tile_b, 1), lambda i: (i, 0)),
        ),
        compiler_params=pltpu.CompilerParams(
            dimension_semantics=("parallel",),
            vmem_limit_bytes=vmem_limit,
        ),
        cost_estimate=cost,
    )(x, w_bf16, inv_sigma, b_folded, shift)

    return out


def reference(x, w, b, mu, log_sigma):
    # Pure-f32, unfolded forward semantics of the instantiated module.
    z = x @ w + b
    inv_sigma = jnp.exp(-log_sigma)
    diff = (z - mu) * inv_sigma
    elem = -0.5 * diff * diff - log_sigma - 0.5 * jnp.log(2.0 * jnp.pi)
    logjoint = jnp.sum(elem, axis=-1, keepdims=True)
    return POST_SCALE * logjoint + POST_SHIFT


if __name__ == "__main__":
    key = jax.random.PRNGKey(0)
    kx, kw, kb, kmu, ks = jax.random.split(key, 5)

    # Small but lane/MXU-aligned shapes (multiples of 128); B=512 with
    # tile_b=128 gives 4 grid steps -> >= 2 steps per v7x TensorCore.
    B, D, H = 512, 128, 128
    x = jax.random.normal(kx, (B, D), dtype=jnp.float32)
    w = jax.random.normal(kw, (D, H), dtype=jnp.float32) * 0.1
    b = jax.random.normal(kb, (1, H), dtype=jnp.float32) * 0.1
    mu = jax.random.normal(kmu, (1, H), dtype=jnp.float32)
    log_sigma = jax.random.normal(ks, (1, H), dtype=jnp.float32) * 0.1

    out = convolved_distribution(x, w, b, mu, log_sigma)
    out = jax.block_until_ready(out)

    ref = reference(x, w, b, mu, log_sigma)
    assert out.shape == (B, 1)
    # bf16 MXU path (x cast in-kernel, W resident in bf16) vs pure-f32 reference.
    assert jnp.allclose(out, ref, rtol=1e-2, atol=0.5), (
        float(jnp.max(jnp.abs(out - ref))))
    print("KERNEL_OK")
</pallas_src>

<mosaic_0001>
module attributes {stable_mosaic.version = 11 : i64} {
  func.func @convolved_dist_kernel(%arg0: i32, %arg1: memref<128x128xf32, #tpu.memory_space<vmem>>, %arg2: memref<128x128xbf16, #tpu.memory_space<vmem>>, %arg3: memref<1x128xf32, #tpu.memory_space<vmem>>, %arg4: memref<1x128xf32, #tpu.memory_space<vmem>>, %arg5: memref<1x1xf32, #tpu.memory_space<smem>>, %arg6: memref<128x1xf32, #tpu.memory_space<vmem>>) attributes {dimension_semantics = [#tpu.dimension_semantics<parallel>], iteration_bounds = array<i64: 4>, scalar_prefetch = 0 : i64, scratch_operands = 0 : i64, tpu.core_type = #tpu.core_type<tc>, window_params = [{transform_indices = @transform_0, window_bounds = array<i64: 128, 128>}, {pipeline_mode = #tpu.pipeline_mode<synchronous>, transform_indices = @transform_1, window_bounds = array<i64: 128, 128>}, {pipeline_mode = #tpu.pipeline_mode<synchronous>, transform_indices = @transform_2, window_bounds = array<i64: 1, 128>}, {pipeline_mode = #tpu.pipeline_mode<synchronous>, transform_indices = @transform_3, window_bounds = array<i64: 1, 128>}, {transform_indices = @transform_4, window_bounds = array<i64: 1, 1>}, {transform_indices = @transform_5, window_bounds = array<i64: 128, 1>}]} {
    %c0 = arith.constant 0 : index
    %c0_0 = arith.constant 0 : index
    %0 = vector.load %arg1[%c0, %c0_0] : memref<128x128xf32, #tpu.memory_space<vmem>>, vector<128x128xf32>
    %1 = arith.truncf %0 : vector<128x128xf32> to vector<128x128xbf16>
    %c0_1 = arith.constant 0 : index
    %c0_2 = arith.constant 0 : index
    %2 = vector.load %arg2[%c0_1, %c0_2] : memref<128x128xbf16, #tpu.memory_space<vmem>>, vector<128x128xbf16>
    %cst = arith.constant dense<0.000000e+00> : vector<128x128xf32>
    %3 = tpu.matmul %1, %2, %cst {dimension_numbers = #tpu.dot_dimension_numbers<[1], [0], [0], [1], [0, 0, 1, 1], [], []>} : vector<128x128xbf16>, vector<128x128xbf16>, vector<128x128xf32> -> vector<128x128xf32>
    %c0_3 = arith.constant 0 : index
    %c0_4 = arith.constant 0 : index
    %4 = vector.load %arg3[%c0_3, %c0_4] : memref<1x128xf32, #tpu.memory_space<vmem>>, vector<1x128xf32>
    %5 = vector.broadcast %4 : vector<1x128xf32> to vector<128x128xf32>
    %6 = arith.mulf %3, %5 : vector<128x128xf32>
    %c0_5 = arith.constant 0 : index
    %c0_6 = arith.constant 0 : index
    %7 = vector.load %arg4[%c0_5, %c0_6] : memref<1x128xf32, #tpu.memory_space<vmem>>, vector<1x128xf32>
    %8 = vector.broadcast %7 : vector<1x128xf32> to vector<128x128xf32>
    %9 = arith.addf %6, %8 : vector<128x128xf32>
    %10 = arith.mulf %9, %9 : vector<128x128xf32>
    %cst_7 = arith.constant dense<0.000000e+00> : vector<128xf32>
    %11 = vector.multi_reduction <add>, %10, %cst_7 [1] : vector<128x128xf32> to vector<128xf32>
    %12 = vector.shape_cast %11 : vector<128xf32> to vector<128x1xf32>
    %cst_8 = arith.constant -2.500000e-01 : f32
    %13 = vector.broadcast %cst_8 : f32 to vector<128x1xf32>
    %14 = arith.mulf %13, %12 : vector<128x1xf32>
    %c0_9 = arith.constant 0 : index
    %c0_10 = arith.constant 0 : index
    %15 = memref.load %arg5[%c0_9, %c0_10] : memref<1x1xf32, #tpu.memory_space<smem>>
    %16 = vector.broadcast %15 : f32 to vector<128x1xf32>
    %17 = arith.addf %14, %16 : vector<128x1xf32>
    %c0_11 = arith.constant 0 : index
    %c0_12 = arith.constant 0 : index
    %18 = vector.load %arg6[%c0_11, %c0_12] : memref<128x1xf32, #tpu.memory_space<vmem>>, vector<128x1xf32>
    tpu.vector_store %arg6[%c0_11, %c0_12], %17 {strides = array<i32>} : memref<128x1xf32, #tpu.memory_space<vmem>>, vector<128x1xf32>,
    return
  }
  func.func @transform_0(%arg0: i32) -> (i32, i32) {
    %c0_i32 = arith.constant 0 : i32
    %c0_i32_0 = arith.constant 0 : i32
    return %arg0, %c0_i32 : i32, i32
  }
  func.func @transform_1(%arg0: i32) -> (i32, i32) {
    %c0_i32 = arith.constant 0 : i32
    %c0_i32_0 = arith.constant 0 : i32
    %c0_i32_1 = arith.constant 0 : i32
    return %c0_i32, %c0_i32_0 : i32, i32
  }
  func.func @transform_2(%arg0: i32) -> (i32, i32) {
    %c0_i32 = arith.constant 0 : i32
    %c0_i32_0 = arith.constant 0 : i32
    %c0_i32_1 = arith.constant 0 : i32
    return %c0_i32, %c0_i32_0 : i32, i32
  }
  func.func @transform_3(%arg0: i32) -> (i32, i32) {
    %c0_i32 = arith.constant 0 : i32
    %c0_i32_0 = arith.constant 0 : i32
    %c0_i32_1 = arith.constant 0 : i32
    return %c0_i32, %c0_i32_0 : i32, i32
  }
  func.func @transform_4(%arg0: i32) -> (i32, i32) {
    %c0_i32 = arith.constant 0 : i32
    %c0_i32_0 = arith.constant 0 : i32
    %c0_i32_1 = arith.constant 0 : i32
    return %c0_i32, %c0_i32_0 : i32, i32
  }
  func.func @transform_5(%arg0: i32) -> (i32, i32) {
    %c0_i32 = arith.constant 0 : i32
    %c0_i32_0 = arith.constant 0 : i32
    return %arg0, %c0_i32 : i32, i32
  }
}

</mosaic_0001>

<bundles_post_ra>
// kernel: tpu_custom_call.1
= control target key start
LH: loop header
LB: loop body
LE: loop exit
PB: predicated region body
PF: predicated region fallthrough
CT: control target
= control target key end

     0   :  { %s1112_s0 = inlined_call_operand.hbm [shape: f32[512,128], index: 0, kind: input, shape index: {}]   ;;  %s1113_s1 = inlined_call_operand.hbm [shape: bf16[128,128], index: 1, kind: input, shape index: {}]   ;;  %s1114_s2 = inlined_call_operand.vmem [shape: f32[1,128], index: 2, kind: input, shape index: {}]   ;;  %s1115_s3 = inlined_call_operand.vmem [shape: f32[1,128], index: 3, kind: input, shape index: {}]   ;;  %s1116_s4 = inlined_call_operand.<no memory space> [shape: f32[1,1], index: 4, kind: input, shape index: {}]   ;;  %s1117_s5 = inlined_call_operand.vmem [shape: f32[512,1], index: 5, kind: output, shape index: {}]  }
   0x1   :  { %10 = sst [smem:[#allocation2]] %s1116_s4 }
   0x2   :  { %11 = vsyncpa [#allocation4], 0 }
   0x3   :  { %13 = vsyncpa [#allocation4 + $0x1], 0 }
   0x4   :  { %14 = vsyncpa [#allocation6], 0  ;;  %s894_s20 = smov 0   ;;  %s896_s21 = smov 0  }
   0x5   :  { %s898_s22 = smov 0   ;;  %s900_s23 = smov 0  }
   0x6 LB: > { %s620_s4 = sadd.s32 4294967295, %s854_s23   ;;  %p40_p0 = scmp.ne.s32.totalorder %s846_s21, %s842_s20  ;;  %s854_s23 = sphi %s900_s23, %s1125_s23   ;;  %s850_s22 = sphi %s898_s22, %s1124_s22   ;;  %s846_s21 = sphi %s896_s21, %s1123_s21   ;;  %s842_s20 = sphi %s894_s20, %s1122_s20  }
   0x7   : > { %p916_p1 = scmp.eq.s32.totalorder %s620_s4, 0  ;;  %p622_p2 = scmp.ge.s32.totalorder %s854_s23, 1 }
   0x8   : > { %p161_p3 = scmp.lt.s32.totalorder %s854_s23, 5  ;;  %s172_s28 = sshll.u32 %s1113_s1, 4  ;;  %s173_s28 = int_to_ptr.hbm [resolvable:$true] %s172_s28 }
   0x9   : > { %p924_p4 = por %p916_p1, %p40_p0  ;;  %s856_s30 = smov [#allocation5]  }
   0xa   : > { %p931_p5 = pnand %p622_p2, %p161_p3  ;;  %s174_s6 = sshll.u32 %s856_s30, 4  ;;  %s175_s6 = int_to_ptr.vmem [resolvable:$true] %s174_s6 }
   0xb   : > { %s940_s7 = sadd.s32 1, %s854_s23   ;;  %s857_s8 = smov 64  }
   0xc   : > { %p706_p6 = pneg %p931_p5  ;;  %s858_s9 = smov 4  }
   0xd   : > { %s24_s10 = ssub.s32 %s854_s23, %s940_s7  ;;  %s27_s11 = sadd.s32 1, %s850_s22 }
   0xe   : > { %p707_p7 = pnand %p706_p6, %p916_p1  ;;  %p25_p8 = scmp.eq.s32.totalorder %s24_s10, 0 }
   0xf   : > { %p34_p9 = scmp.ne.s32.totalorder %s850_s22, %s846_s21  ;;  %p35_p10 = scmp.eq.s32.totalorder %s854_s23, 0 }
  0x10   : > { %709 = dma.hbm_to_vmem [thread:$0]  (!%p707_p7), %s173_s28, 1024, %s175_s6, [#allocation6], %s857_s8, %s857_s8, %s858_s9  }
  0x11   : > { %p715_p11 = scmp.lt.s32.totalorder %s854_s23, 4  ;;  %p36_p12 = por %p35_p10, %p34_p9 }
  0x12   : > { %s950_s12 = scalar_select %p25_p8, %s850_s22, %s27_s11  }
  0x13   : > { %s197_s13 = sand.u32 1, %s850_s22   ;;  %s667_s15 = sshll.u32 %s854_s23, 7 }
  0x14   : > { %s625_s14 = sshll.u32 %s197_s13, 7  ;;  %s206_s18 = scalar_lea.hbm %s1112_s0, %s667_s15 }
  0x15   : > { %s201_s19 = scalar_lea.vmem [#allocation3], %s625_s14  ;;  %s207_s26 = sshll.u32 %s206_s18, 4  ;;  %s208_s26 = int_to_ptr.hbm [resolvable:$true] %s207_s26 }
  0x16   : > { %s209_s20 = sshll.u32 %s201_s19, 4  ;;  %p957_p13 = pnand %p715_p11, %p36_p12  ;;  %s210_s20 = int_to_ptr.vmem [resolvable:$true] %s209_s20 }
  0x17   : > { %s198_s28 = scalar_lea.sflag [#allocation4], %s197_s13  ;;  %s786_s30 = sshra.s32 %s208_s26, 4  ;;  %s787_s30 = int_to_ptr.hbm [resolvable:$true] %s786_s30 }
  0x18   : > { %s788_s6 = scalar_lea.hbm %s787_s30, 128  ;;  %p790_p2 = pneg %p957_p13 }
  0x19   : > { %p789_p0 = scmp.ne.s32.totalorder %s787_s30, %s788_s6  ;;  %s793_s10 = scalar_lea.hbm %s1112_s0, 512 }
  0x1a   : > { %p794_p7 = scmp.lt.s32.totalorder %s787_s30, %s1112_s0  ;;  %p795_p8 = scmp.lt.s32.totalorder %s793_s10, %s788_s6 }
  0x1b   : > { %p791_p3 = pnand %p790_p2, %p789_p0 }
  0x1c   : > { %p796_p9 = por %p795_p8, %p794_p7 }
  0x1d   : > { %p792_p6 = pneg %p791_p3 }
  0x1f   : > { %p797_p10 = pnand %p796_p9, %p792_p6 }
  0x21   : > { %800 = shalt.err (!%p797_p10)
}
  0x22   : > { %s859_s13 = smov 128   ;;  %s860_s15 = smov 8  }
  0x23   : > { %713 = dma.hbm_to_vmem [thread:$0]  (!%p957_p13), %s208_s26, 2048, %s210_s20, %s198_s28, %s859_s13, %s859_s13, %s860_s15  }
  0x24   : > { %221 = sbr.rel (%p931_p5) target bundleno = 378 (0x17a), region = 40  ;;  %s223_s16 = sand.u32 (!%p931_p5), 1, %s846_s21  }
  0x25   : > { %s629_s17 = sshll.u32 (!%p931_p5), %s223_s16, 7  ;;  %s224_s18 = scalar_lea.sflag (!%p931_p5), [#allocation4], %s223_s16 }
  0x26   : > { %s974_s19 = scalar_lea.vmem (!%p931_p5), [#allocation3], %s629_s17 }
  0x29   : > { %833 = dma.done.wait (%p924_p4), %s224_s18, 2048  }
  0x2a   : > { %835 = vsyncadd (%p924_p4), %s224_s18, 4294965248 }
  0x2b   : > { %837 = dma.done.wait (%p916_p1), [#allocation6], 1024  }
  0x2c   : > { %839 = vsyncadd (%p916_p1), [#allocation6], 4294966272  ;;  %v675_v0 = vld [vmem:[#allocation5 + $0x38] sm:$0xff]  ;;  %v674_v1 = vld [vmem:[#allocation5 + $0x30] sm:$0xff]  ;;  %s631_s26 = sshll.u32 %s620_s4, 4  ;;  %s508_s27 = sld [smem:[#allocation2]] }
  0x2d   : > { %355 = vmatpush.bf16.msra.mxu0 %v675_v0  ;;  %676 = vmatpush.bf16.msra.mxu1 %v675_v0  ;;  %v673_v2 = vld [vmem:[#allocation5 + $0x28] sm:$0xff]  ;;  %v672_v3 = vld [vmem:[#allocation5 + $0x20] sm:$0xff]  ;;  %v671_v4 = vld [vmem:[#allocation5 + $0x18] sm:$0xff]  ;;  %p262_p1 = scmp.lt.s32.totalorder %s631_s26, 63  ;;  %vm526_vm0 = vcmask 7168  }
  0x2e   : > { %677 = vmatpush.bf16.msra.mxu2 %v675_v0  ;;  %678 = vmatpush.bf16.msra.mxu3 %v675_v0  ;;  %v670_v5 = vld [vmem:[#allocation5 + $0x10] sm:$0xff]  ;;  %v669_v6 = vld [vmem:[#allocation5 + $0x8] sm:$0xff]  ;;  %v668_v7 = vld [vmem:[#allocation5] sm:$0xff] }
  0x2f   : > { %v267_v8 = vld [vmem:[%s974_s19] sm:$0xff]  ;;  %v268_v9 = vld [vmem:[%s974_s19 + $0x8] sm:$0xff]  ;;  %v269_v20 = vld [vmem:[%s974_s19 + $0x10] sm:$0xff]  ;;  %s1127_s26 = smov (!%p262_p1, %s631_s26), 63 }
  0x30   : > { %v271_v10 = vld [vmem:[%s974_s19 + $0x20] sm:$0xff]  ;;  %v272_v11 = vld [vmem:[%s974_s19 + $0x28] sm:$0xff]  ;;  %v283_v16 = vpack.c.bf16 %v268_v9, %v267_v8  ;;  %v270_v21 = vld [vmem:[%s974_s19 + $0x18] sm:$0xff]  ;;  %s632_s28 = sshll.u32 %s1127_s26, 3 }
  0x31   : > { %356 = vmatpush.bf16.msra.mxu0 %v674_v1  ;;  %679 = vmatpush.bf16.msra.mxu1 %v674_v1  ;;  %v275_v12 = vld [vmem:[%s974_s19 + $0x40] sm:$0xff]  ;;  %v276_v13 = vld [vmem:[%s974_s19 + $0x48] sm:$0xff]  ;;  %v285_v17 = vpack.c.bf16 %v272_v11, %v271_v10  ;;  %v277_v22 = vld [vmem:[%s974_s19 + $0x50] sm:$0xff]  ;;  %v284_v28 = vpack.c.bf16 %v270_v21, %v269_v20  ;;  %s1049_s8 = scalar_lea.vmem %s1117_s5, %s632_s28 }
  0x32   : > { %680 = vmatpush.bf16.msra.mxu2 %v674_v1  ;;  %681 = vmatpush.bf16.msra.mxu3 %v674_v1  ;;  %v279_v14 = vld [vmem:[%s974_s19 + $0x60] sm:$0xff]  ;;  %v280_v15 = vld [vmem:[%s974_s19 + $0x68] sm:$0xff]  ;;  %v287_v18 = vpack.c.bf16 %v276_v13, %v275_v12  ;;  %v273_v23 = vld [vmem:[%s974_s19 + $0x30] sm:$0xff] }
  0x33   : > { %v289_v19 = vpack.c.bf16 %v280_v15, %v279_v14  ;;  %v274_v24 = vld [vmem:[%s974_s19 + $0x38] sm:$0xff]  ;;  %v281_v26 = vld [vmem:[%s974_s19 + $0x70] sm:$0xff]  ;;  %v1003_v32 = vld [vmem:[%s1114_s2] ss:$0 sm:$0xff] }
  0x34   : > { %v278_v25 = vld [vmem:[%s974_s19 + $0x58] sm:$0xff]  ;;  %v286_v29 = vpack.c.bf16 %v274_v24, %v273_v23  ;;  %v1008_v33 = vld [vmem:[%s1115_s3] ss:$0 sm:$0xff] }
  0x35   : > { %357 = vmatpush.bf16.msra.mxu0 %v673_v2  ;;  %682 = vmatpush.bf16.msra.mxu1 %v673_v2  ;;  %v282_v27 = vld [vmem:[%s974_s19 + $0x78] sm:$0xff]  ;;  %v288_v30 = vpack.c.bf16 %v278_v25, %v277_v22 }
  0x36   : > { %683 = vmatpush.bf16.msra.mxu2 %v673_v2  ;;  %684 = vmatpush.bf16.msra.mxu3 %v673_v2  ;;  %v290_v31 = vpack.c.bf16 %v282_v27, %v281_v26 }
  0x39   : > { %358 = vmatpush.bf16.msra.mxu0 %v672_v3  ;;  %685 = vmatpush.bf16.msra.mxu1 %v672_v3 }
  0x3a   : > { %686 = vmatpush.bf16.msra.mxu2 %v672_v3  ;;  %687 = vmatpush.bf16.msra.mxu3 %v672_v3 }
  0x3d   : > { %359 = vmatpush.bf16.msra.mxu0 %v671_v4  ;;  %688 = vmatpush.bf16.msra.mxu1 %v671_v4 }
  0x3e   : > { %689 = vmatpush.bf16.msra.mxu2 %v671_v4  ;;  %690 = vmatpush.bf16.msra.mxu3 %v671_v4 }
  0x41   : > { %360 = vmatpush.bf16.msra.mxu0 %v670_v5  ;;  %691 = vmatpush.bf16.msra.mxu1 %v670_v5 }
  0x42   : > { %692 = vmatpush.bf16.msra.mxu2 %v670_v5  ;;  %693 = vmatpush.bf16.msra.mxu3 %v670_v5 }
  0x45   : > { %361 = vmatpush.bf16.msra.mxu0 %v669_v6  ;;  %694 = vmatpush.bf16.msra.mxu1 %v669_v6 }
  0x46   : > { %695 = vmatpush.bf16.msra.mxu2 %v669_v6  ;;  %696 = vmatpush.bf16.msra.mxu3 %v669_v6 }
  0x49   : > { %362 = vmatpush.bf16.msra.mxu0 %v668_v7  ;;  %697 = vmatpush.bf16.msra.mxu1 %v668_v7 }
  0x4a   : > { %698 = vmatpush.bf16.msra.mxu2 %v668_v7  ;;  %699 = vmatpush.bf16.msra.mxu3 %v668_v7 }
  0x4c   : > { %363 = vmatmul.bf16.vlgmr.msra.gmra.mxu0 %v283_v16  ;;  %373 = vmatmul.bf16.vlgmr.msra.gmra.mxu1 %v285_v17 }
  0x4d   : > { %383 = vmatmul.bf16.vlgmr.msra.gmra.mxu2 %v287_v18  ;;  %393 = vmatmul.bf16.vlgmr.msra.gmra.mxu3 %v289_v19 }
  0x5c   : > { %368 = vmatmul.bf16.gmra.mxu0 %v284_v28  ;;  %378 = vmatmul.bf16.gmra.mxu1 %v286_v29 }
  0x5d   : > { %388 = vmatmul.bf16.gmra.mxu2 %v288_v30  ;;  %398 = vmatmul.bf16.gmra.mxu3 %v290_v31 }
  0xc9   : > { %v364_v34 = vpop.f32.mrf.mxu0  ;;  %v374_v35 = vpop.f32.mrf.mxu1 }
  0xca   : > { %v408_v36 = vmul.f32 %v1003_v32, %v364_v34  ;;  %v412_v37 = vmul.f32 %v1003_v32, %v374_v35 }
  0xcc   : > { %v432_v38 = vadd.f32 %v1008_v33, %v412_v37  ;;  %v428_v39 = vadd.f32 %v1008_v33, %v408_v36  ;;  %v1044_v36 = vstv %s508_s27 }
  0xce   : > { %v448_v40 = vmul.f32 %v432_v38, %v432_v38  ;;  %v444_v41 = vmul.f32 %v428_v39, %v428_v39 }
  0xd0   : > { %v384_v42 = vpop.f32.mrf.mxu2  ;;  %468 = vadd.xlane.f32.xlu2 %v448_v40  ;;  %460 = vadd.xlane.f32.xlu0 %v444_v41  ;;  %v394_v43 = vpop.f32.mrf.mxu3 }
  0xd1   : > { %v416_v44 = vmul.f32 %v1003_v32, %v384_v42  ;;  %v366_v45 = vpop.f32.mrf.mxu0  ;;  %v420_v46 = vmul.f32 %v1003_v32, %v394_v43  ;;  %v376_v47 = vpop.f32.mrf.mxu1 }
  0xd2   : > { %v413_v50 = vmul.f32 %v1003_v32, %v376_v47  ;;  %v409_v53 = vmul.f32 %v1003_v32, %v366_v45 }
  0xd3   : > { %v436_v48 = vadd.f32 %v1008_v33, %v416_v44  ;;  %v440_v49 = vadd.f32 %v1008_v33, %v420_v46 }
  0xd4   : > { %v433_v56 = vadd.f32 %v1008_v33, %v413_v50  ;;  %v429_v59 = vadd.f32 %v1008_v33, %v409_v53 }
  0xd5   : > { %v452_v51 = vmul.f32 %v436_v48, %v436_v48  ;;  %v456_v52 = vmul.f32 %v440_v49, %v440_v49 }
  0xd6   : > { %v449_v60 = vmul.f32 %v433_v56, %v433_v56  ;;  %v445_v63 = vmul.f32 %v429_v59, %v429_v59 }
  0xd8   : > { %v386_v54 = vpop.f32.mrf.mxu2  ;;  %476 = vadd.xlane.f32.xlu2 %v452_v51  ;;  %484 = vadd.xlane.f32.xlu0 %v456_v52  ;;  %v396_v55 = vpop.f32.mrf.mxu3 }
  0xd9   : > { %v369_v57 = vpop.f32.mrf.mxu0  ;;  %v417_v62 = vmul.f32 %v1003_v32, %v386_v54  ;;  %v379_v4 = vpop.f32.mrf.mxu1  ;;  %v421_v30 = vmul.f32 %v1003_v32, %v396_v55 }
  0xda   : > { %v410_v58 = vmul.f32 %v1003_v32, %v369_v57  ;;  %v414_v8 = vmul.f32 %v1003_v32, %v379_v4 }
  0xdb   : > { %v437_v5 = vadd.f32 %v1008_v33, %v417_v62  ;;  %v441_v34 = vadd.f32 %v1008_v33, %v421_v30 }
  0xdc   : > { %v430_v61 = vadd.f32 %v1008_v33, %v410_v58  ;;  %v434_v13 = vadd.f32 %v1008_v33, %v414_v8 }
  0xdd   : > { %v453_v10 = vmul.f32 %v437_v5, %v437_v5  ;;  %v457_v35 = vmul.f32 %v441_v34, %v441_v34 }
  0xde   : > { %v446_v0 = vmul.f32 %v430_v61, %v430_v61  ;;  %v450_v20 = vmul.f32 %v434_v13, %v434_v13 }
  0xe0   : > { %v389_v1 = vpop.f32.mrf.mxu2  ;;  %470 = vadd.xlane.f32.xlu2 %v449_v60  ;;  %462 = vadd.xlane.f32.xlu0 %v445_v63  ;;  %v399_v2 = vpop.f32.mrf.mxu3 }
  0xe1   : > { %v418_v3 = vmul.f32 %v1003_v32, %v389_v1  ;;  %464 = vadd.xlane.f32.xlu1 %v446_v0  ;;  %v371_v7 = vpop.f32.mrf.mxu0  ;;  %v422_v16 = vmul.f32 %v1003_v32, %v399_v2  ;;  %v381_v19 = vpop.f32.mrf.mxu1 }
  0xe2   : > { %v411_v11 = vmul.f32 %v1003_v32, %v371_v7  ;;  %v415_v23 = vmul.f32 %v1003_v32, %v381_v19 }
  0xe3   : > { %v438_v6 = vadd.f32 %v1008_v33, %v418_v3  ;;  %v442_v25 = vadd.f32 %v1008_v33, %v422_v16 }
  0xe4   : > { %v431_v18 = vadd.f32 %v1008_v33, %v411_v11  ;;  %v435_v28 = vadd.f32 %v1008_v33, %v415_v23 }
  0xe5   : > { %v454_v9 = vmul.f32 %v438_v6, %v438_v6  ;;  %v458_v27 = vmul.f32 %v442_v25, %v442_v25 }
  0xe6   : > { %v447_v24 = vmul.f32 %v431_v18, %v431_v18  ;;  %v451_v31 = vmul.f32 %v435_v28, %v435_v28 }
  0xe8   : > { %v391_v12 = vpop.f32.mrf.mxu2  ;;  %478 = vadd.xlane.f32.xlu0 %v453_v10  ;;  %v401_v15 = vpop.f32.mrf.mxu3 }
  0xe9   : > { %v419_v14 = vmul.f32 %v1003_v32, %v391_v12  ;;  %480 = vadd.xlane.f32.xlu1 %v454_v9  ;;  %v423_v21 = vmul.f32 %v1003_v32, %v401_v15 }
  0xeb   : > { %v439_v17 = vadd.f32 %v1008_v33, %v419_v14  ;;  %v443_v26 = vadd.f32 %v1008_v33, %v423_v21 }
  0xed   : > { %v455_v22 = vmul.f32 %v439_v17, %v439_v17  ;;  %v459_v29 = vmul.f32 %v443_v26, %v443_v26 }
  0xef   : > { %482 = vadd.xlane.f32.xlu2 %v455_v22 }
  0xf0   : > { %472 = vadd.xlane.f32.xlu0 %v450_v20 }
  0xf1   : > { %466 = vadd.xlane.f32.xlu1 %v447_v24 }
  0xf7   : > { %488 = vadd.xlane.f32.xlu2 %v458_v27 }
  0xf8   : > { %490 = vadd.xlane.f32.xlu0 %v459_v29 }
  0xf9   : > { %474 = vadd.xlane.f32.xlu1 %v451_v31 }
 0x101   : > { %486 = vadd.xlane.f32.xlu1 %v457_v35 }
 0x143   : > { %v469_v37 = vpop.xlane.xlu2 %468  ;;  %v461_v38 = vpop.xlane.xlu0 %460 }
 0x144   : > { %v496_v39 = vmul.f32 -0.25, %v469_v37  ;;  %v492_v32 = vmul.f32 -0.25, %v461_v38 }
 0x146   : > { %v514_v33 = vadd.f32 %v1044_v36, %v496_v39  ;;  %v510_v40 = vadd.f32 %v1044_v36, %v492_v32 }
 0x148   : > { %531 = vst.msk [vmem:[%s1049_s8 + $0x20] sm:$0xff] %vm526_vm0, %v514_v33 }
 0x149   : > { %527 = vst.msk [vmem:[%s1049_s8] sm:$0xff] %vm526_vm0, %v510_v40 }
 0x14b   : > { %v477_v41 = vpop.xlane.xlu2 %476  ;;  %v485_v42 = vpop.xlane.xlu0 %484 }
 0x14c   : > { %v500_v43 = vmul.f32 -0.25, %v477_v41  ;;  %v504_v44 = vmul.f32 -0.25, %v485_v42 }
 0x14e   : > { %v518_v45 = vadd.f32 %v1044_v36, %v500_v43  ;;  %v522_v46 = vadd.f32 %v1044_v36, %v504_v44 }
 0x150   : > { %535 = vst.msk [vmem:[%s1049_s8 + $0x40] sm:$0xff] %vm526_vm0, %v518_v45 }
 0x151   : > { %539 = vst.msk [vmem:[%s1049_s8 + $0x60] sm:$0xff] %vm526_vm0, %v522_v46 }
 0x153   : > { %v471_v47 = vpop.xlane.xlu2 %470  ;;  %v463_v48 = vpop.xlane.xlu0 %462 }
 0x154   : > { %v497_v49 = vmul.f32 -0.25, %v471_v47  ;;  %v493_v50 = vmul.f32 -0.25, %v463_v48  ;;  %v465_v51 = vpop.xlane.xlu1 %464 }
 0x155   : > { %v494_v52 = vmul.f32 -0.25, %v465_v51 }
 0x156   : > { %v515_v53 = vadd.f32 %v1044_v36, %v497_v49  ;;  %v511_v54 = vadd.f32 %v1044_v36, %v493_v50 }
 0x157   : > { %v512_v55 = vadd.f32 %v1044_v36, %v494_v52 }
 0x158   : > { %532 = vst.msk [vmem:[%s1049_s8 + $0x28] sm:$0xff] %vm526_vm0, %v515_v53 }
 0x159   : > { %528 = vst.msk [vmem:[%s1049_s8 + $0x8] sm:$0xff] %vm526_vm0, %v511_v54 }
 0x15a   : > { %529 = vst.msk [vmem:[%s1049_s8 + $0x10] sm:$0xff] %vm526_vm0, %v512_v55 }
 0x15b   : > { %v479_v56 = vpop.xlane.xlu0 %478 }
 0x15c   : > { %v501_v57 = vmul.f32 -0.25, %v479_v56  ;;  %v481_v58 = vpop.xlane.xlu1 %480 }
 0x15d   : > { %v502_v59 = vmul.f32 -0.25, %v481_v58 }
 0x15e   : > { %v519_v60 = vadd.f32 %v1044_v36, %v501_v57 }
 0x15f   : > { %v520_v61 = vadd.f32 %v1044_v36, %v502_v59 }
 0x160   : > { %536 = vst.msk [vmem:[%s1049_s8 + $0x48] sm:$0xff] %vm526_vm0, %v519_v60 }
 0x161   : > { %537 = vst.msk [vmem:[%s1049_s8 + $0x50] sm:$0xff] %vm526_vm0, %v520_v61 }
 0x162   : > { %v483_v62 = vpop.xlane.xlu2 %482 }
 0x163   : > { %v503_v63 = vmul.f32 -0.25, %v483_v62  ;;  %v473_v0 = vpop.xlane.xlu0 %472 }
 0x164   : > { %v498_v1 = vmul.f32 -0.25, %v473_v0  ;;  %v467_v2 = vpop.xlane.xlu1 %466 }
 0x165   : > { %v521_v3 = vadd.f32 %v1044_v36, %v503_v63  ;;  %v495_v4 = vmul.f32 -0.25, %v467_v2 }
 0x166   : > { %v516_v5 = vadd.f32 %v1044_v36, %v498_v1 }
 0x167   : > { %538 = vst.msk [vmem:[%s1049_s8 + $0x58] sm:$0xff] %vm526_vm0, %v521_v3  ;;  %v513_v6 = vadd.f32 %v1044_v36, %v495_v4 }
 0x168   : > { %533 = vst.msk [vmem:[%s1049_s8 + $0x30] sm:$0xff] %vm526_vm0, %v516_v5 }
 0x169   : > { %530 = vst.msk [vmem:[%s1049_s8 + $0x18] sm:$0xff] %vm526_vm0, %v513_v6 }
 0x16a   : > { %v489_v7 = vpop.xlane.xlu2 %488 }
 0x16b   : > { %v506_v8 = vmul.f32 -0.25, %v489_v7  ;;  %v491_v9 = vpop.xlane.xlu0 %490 }
 0x16c   : > { %v507_v10 = vmul.f32 -0.25, %v491_v9  ;;  %v475_v11 = vpop.xlane.xlu1 %474 }
 0x16d   : > { %v524_v12 = vadd.f32 %v1044_v36, %v506_v8  ;;  %v499_v13 = vmul.f32 -0.25, %v475_v11 }
 0x16e   : > { %v525_v14 = vadd.f32 %v1044_v36, %v507_v10 }
 0x16f   : > { %541 = vst.msk [vmem:[%s1049_s8 + $0x70] sm:$0xff] %vm526_vm0, %v524_v12  ;;  %v517_v15 = vadd.f32 %v1044_v36, %v499_v13 }
 0x170   : > { %542 = vst.msk [vmem:[%s1049_s8 + $0x78] sm:$0xff] %vm526_vm0, %v525_v14 }
 0x171   : > { %534 = vst.msk [vmem:[%s1049_s8 + $0x38] sm:$0xff] %vm526_vm0, %v517_v15 }
 0x174   : > { %v487_v16 = vpop.xlane.xlu1 %486 }
 0x175   : > { %v505_v17 = vmul.f32 -0.25, %v487_v16 }
 0x177   : > { %v523_v18 = vadd.f32 %v1044_v36, %v505_v17 }
 0x179   : > { %540 = vst.msk [vmem:[%s1049_s8 + $0x68] sm:$0xff] %vm526_vm0, %v523_v18 }
 0x17a PF: > { %p17_p4 = scmp.ge.s32.totalorder %s940_s7, 6   ;;  %s1122_s20 = smov %s846_s21 }
 0x17b   : > { %s1123_s21 = smov %s850_s22  ;;  %s1124_s22 = smov %s950_s12 }
 0x17c   : > { %s1125_s23 = smov %s940_s7  ;;  %19 = sbr.rel (!%p17_p4) target bundleno = 6 (0x6), region = 84 }
 0x181   :  { %565 = vsyncpa [#allocation4], 1 }
 0x182   :  { %567 = vsyncpa [#allocation4 + $0x1], 1 }
 0x183   :  { %568 = vsyncpa [#allocation6], 1 }

</bundles_post_ra>
